<compile_context>
chip_gen: v5e
topology: v5e:2x2
jax: 0.10.0
libtpu: 0.0.40
codegen_flags: <defaults>
</compile_context>

<pallas_src>
import jax
import jax.numpy as jnp
from jax.experimental import pallas as pl
from jax.experimental.pallas import tpu as pltpu


def _relu3_kernel(x_ref, o_ref):
    # relu(x + 3), fully vectorized on the VPU
    x = x_ref[...]
    o_ref[...] = jnp.maximum(x + jnp.asarray(3, x.dtype), jnp.asarray(0, x.dtype))


def _sublane_for_dtype(dtype):
    # Native sublane tile height by element width: f32 -> 8, bf16 -> 16, int8 -> 32.
    itemsize = jnp.dtype(dtype).itemsize
    return max(8, 32 // max(itemsize, 1))


_LANE_CANDIDATES = (2048, 1024, 512, 256, 128)


def _tpu_config():
    """Generation-aware tuning knobs, derived from the attached device kind."""
    kind = ""
    try:
        kind = jax.devices()[0].device_kind.lower()
    except Exception:  # no device / CPU trace-time — fall back to safe defaults
        pass
    # Conservative defaults (also covers v5e / v4 / unknown): 2 MiB tiles,
    # compiler-default scoped VMEM (2 MiB x 2 arrays x 2 buffers = 8 MiB fits
    # even v5e's 16 MiB scoped default), single TensorCore.
    cfg = {"tile_bytes": 2 << 20, "vmem_limit": None, "cores": 1, "v7x": False}
    if "v7" in kind:
        # 64 MiB physical VMEM: 4 MiB tiles x 2 arrays x 2 buffers = 16 MiB,
        # scoped limit raised to 40 MiB leaves headroom for compiler scratch.
        cfg = {"tile_bytes": 4 << 20, "vmem_limit": 40 << 20, "cores": 2, "v7x": True}
    elif "v6" in kind:
        # 128 MiB physical VMEM: 4 MiB tiles, 64 MiB scoped is plenty safe.
        cfg = {"tile_bytes": 4 << 20, "vmem_limit": 64 << 20, "cores": 1, "v7x": False}
    elif "v5p" in kind:
        cfg = {"tile_bytes": 4 << 20, "vmem_limit": 64 << 20, "cores": 2, "v7x": False}
    elif "v5e" in kind or "v5 lite" in kind or "v5lite" in kind:
        cfg = {"tile_bytes": 2 << 20, "vmem_limit": 32 << 20, "cores": 1, "v7x": False}
    return cfg


def _dimension_semantics(cfg):
    if cfg["v7x"]:
        # Explicitly shard the row grid across both v7x TensorCores so each
        # TC streams its own blocks (own DMA path).
        try:
            return (pltpu.CORE_PARALLEL,)
        except AttributeError:
            return ("parallel",)
    return ("parallel",)


def _run_2d(x2d, block_rows, lanes, cfg, *, donate=False):
    rows = x2d.shape[0]
    grid_rows = pl.cdiv(rows, block_rows)
    n = x2d.size
    nbytes = n * jnp.dtype(x2d.dtype).itemsize

    cp_kwargs = {"dimension_semantics": _dimension_semantics(cfg)}
    if cfg["vmem_limit"] is not None:
        cp_kwargs["vmem_limit_bytes"] = cfg["vmem_limit"]

    call_kwargs = {}
    if donate:
        call_kwargs["input_output_aliases"] = {0: 0}

    return pl.pallas_call(
        _relu3_kernel,
        out_shape=jax.ShapeDtypeStruct(x2d.shape, x2d.dtype),
        grid_spec=pltpu.PrefetchScalarGridSpec(
            num_scalar_prefetch=0,
            grid=(grid_rows,),
            in_specs=[pl.BlockSpec((block_rows, lanes), lambda i: (i, 0))],
            out_specs=pl.BlockSpec((block_rows, lanes), lambda i: (i, 0)),
        ),
        compiler_params=pltpu.CompilerParams(**cp_kwargs),
        cost_estimate=pl.CostEstimate(
            flops=n, transcendentals=0, bytes_accessed=2 * nbytes),
        **call_kwargs,
    )(x2d)


def custom_activation(x, *, min_pallas_bytes=1 << 20, donate=False):
    """Apply relu(x + 3) elementwise to an arbitrarily-shaped array."""
    dtype = x.dtype
    n = x.size
    itemsize = jnp.dtype(dtype).itemsize
    nbytes = n * itemsize

    def fused(v):
        # XLA's fused 2-op elementwise loop is already at HBM roofline.
        return jnp.maximum(v + jnp.asarray(3, dtype), jnp.asarray(0, dtype))

    # Tiny inputs: pallas_call launch + reshape overhead dominates.
    if n == 0 or nbytes < min_pallas_bytes:
        return fused(x)

    # Pick the widest lane-dense last dim that divides n exactly
    # (zero-copy reshape: no pad, no trailing-slice copy).
    lanes = None
    for cand in _LANE_CANDIDATES:
        if n % cand == 0:
            lanes = cand
            break
    if lanes is None:
        # Ragged size (n % 128 != 0): the old pad->kernel->slice round trip
        # costs ~3x the minimum HBM traffic; the fused XLA loop is optimal.
        return fused(x)

    cfg = _tpu_config()
    sublane = _sublane_for_dtype(dtype)
    rows = n // lanes

    # ~target tile bytes per block, rounded down to a sublane multiple.
    target_rows = cfg["tile_bytes"] // (lanes * itemsize)
    target_rows = max(sublane, (target_rows // sublane) * sublane)
    if target_rows < rows:
        block_rows = target_rows
    elif cfg["cores"] >= 2 and rows >= 4 * sublane:
        # Whole array fits in one tile; only on multi-TC chips is it worth
        # splitting so each core gets a block (on 1-TC chips the grid is a
        # serial loop and the extra step is pure overhead).
        half = ((rows + 1) // 2 + sublane - 1) // sublane * sublane
        block_rows = half if half < rows else rows
    else:
        block_rows = rows  # single block == full dims -> always legal

    x2d = x.reshape(rows, lanes)
    out = _run_2d(x2d, block_rows, lanes, cfg, donate=donate)
    return out.reshape(x.shape)


if __name__ == "__main__":
    key = jax.random.PRNGKey(0)
    k1, k2 = jax.random.split(key)

    # NCHW, matching the PyTorch convention (batch=2, channels=4, spatial=16).
    x_small = jax.random.normal(k1, (2, 4, 16, 16), dtype=jnp.float32) * 5.0
    # Force the Pallas path even though this tensor is below the small-input
    # early-out threshold, so the kernel itself is exercised.
    y_small = custom_activation(x_small, min_pallas_bytes=0)
    jax.block_until_ready(y_small)
    ref_small = jnp.maximum(x_small + 3.0, 0.0)
    assert y_small.shape == x_small.shape and y_small.dtype == x_small.dtype
    assert jnp.array_equal(y_small, ref_small), "mismatch vs reference (small)"

    # Larger tensor exercising the zero-copy big-tile fast path
    # (4 MiB f32 -> (512, 2048) slab).
    x_big = jax.random.normal(k2, (8, 8, 128, 128), dtype=jnp.float32)
    y_big = custom_activation(x_big)
    jax.block_until_ready(y_big)
    assert jnp.array_equal(y_big, jnp.maximum(x_big + 3.0, 0.0)), \
        "mismatch vs reference (big)"

    # Ragged size: routed to the fused XLA path (no pad/slice round trip).
    x_rag = jax.random.normal(k1, (3, 5, 7, 11), dtype=jnp.float32)
    y_rag = custom_activation(x_rag, min_pallas_bytes=0)
    jax.block_until_ready(y_rag)
    assert jnp.array_equal(y_rag, jnp.maximum(x_rag + 3.0, 0.0)), \
        "mismatch vs reference (ragged)"

    print("KERNEL_OK")
</pallas_src>

<mosaic_0001>
module attributes {stable_mosaic.version = 11 : i64} {
  func.func @_relu3_kernel(%arg0: i32, %arg1: memref<1x2048xf32, #tpu.memory_space<vmem>>, %arg2: memref<1x2048xf32, #tpu.memory_space<vmem>>) attributes {dimension_semantics = [#tpu.dimension_semantics<parallel>], iteration_bounds = array<i64: 1>, scalar_prefetch = 0 : i64, scratch_operands = 0 : i64, tpu.core_type = #tpu.core_type<tc>, window_params = [{transform_indices = @transform_0, window_bounds = array<i64: 1, 2048>}, {transform_indices = @transform_1, window_bounds = array<i64: 1, 2048>}]} {
    %c0 = arith.constant 0 : index
    %c0_0 = arith.constant 0 : index
    %0 = vector.load %arg1[%c0, %c0_0] : memref<1x2048xf32, #tpu.memory_space<vmem>>, vector<1x2048xf32>
    %cst = arith.constant 3.000000e+00 : f32
    %1 = vector.broadcast %cst : f32 to vector<1x2048xf32>
    %2 = arith.addf %0, %1 : vector<1x2048xf32>
    %cst_1 = arith.constant 0.000000e+00 : f32
    %3 = vector.broadcast %cst_1 : f32 to vector<1x2048xf32>
    %4 = arith.maximumf %2, %3 : vector<1x2048xf32>
    %c0_2 = arith.constant 0 : index
    %c0_3 = arith.constant 0 : index
    %5 = vector.load %arg2[%c0_2, %c0_3] : memref<1x2048xf32, #tpu.memory_space<vmem>>, vector<1x2048xf32>
    tpu.vector_store %arg2[%c0_2, %c0_3], %4 {strides = array<i32>} : memref<1x2048xf32, #tpu.memory_space<vmem>>, vector<1x2048xf32>,
    return
  }
  func.func @transform_0(%arg0: i32) -> (i32, i32) {
    %c0_i32 = arith.constant 0 : i32
    %c0_i32_0 = arith.constant 0 : i32
    return %arg0, %c0_i32 : i32, i32
  }
  func.func @transform_1(%arg0: i32) -> (i32, i32) {
    %c0_i32 = arith.constant 0 : i32
    %c0_i32_0 = arith.constant 0 : i32
    return %arg0, %c0_i32 : i32, i32
  }
}

</mosaic_0001>

<bundles_post_ra>
// kernel: tpu_custom_call.1
= control target key start
LH: loop header
LB: loop body
LE: loop exit
PB: predicated region body
PF: predicated region fallthrough
CT: control target
= control target key end

     0   :  { %6 = vsyncpa [#allocation3], 0  ;;  %s120_s0 = inlined_call_operand.hbm [shape: f32[1,2048], index: 0, kind: input, shape index: {}]   ;;  %s121_s1 = inlined_call_operand.hbm [shape: f32[1,2048], index: 1, kind: output, shape index: {}]  }
   0x1   :  { %7 = vsyncpa [#allocation4], 0  ;;  %s13_s8 = sshll.u32 %s120_s0, 4  ;;  %s102_s9 = smov [#allocation2]   ;;  %s14_s8 = int_to_ptr.hbm [resolvable:$true] %s13_s8 }
   0x2   :  { %s15_s10 = sshll.u32 %s102_s9, 4  ;;  %s16_s10 = int_to_ptr.vmem [resolvable:$true] %s15_s10 }
   0x3   :  { %18 = dma.hbm_to_vmem [thread:$0]  %s14_s8, 256, %s16_s10, [#allocation3]  }
   0x4   :  { %98 = dma.done.wait [#allocation3], 256  }
   0x5   :  { %99 = vsyncadd [#allocation3], 4294967040  ;;  %v23_v0 = vld [vmem:[#allocation2] sm:$0xff]  ;;  %v24_v1 = vld [vmem:[#allocation2 + $0x8] sm:$0xff]  ;;  %s103_s11 = smov [#allocation5]   ;;  %s38_s15 = sshll.u32 %s121_s1, 4  ;;  %s39_s15 = int_to_ptr.hbm [resolvable:$true] %s38_s15 }
   0x6   :  { %v25_v2 = vadd.f32 3.0, %v23_v0  ;;  %v26_v3 = vadd.f32 3.0, %v24_v1  ;;  %s36_s12 = sshll.u32 %s103_s11, 4  ;;  %s37_s12 = int_to_ptr.vmem [resolvable:$true] %s36_s12 }
   0x8   :  { %v27_v4 = vmax.f32 %v25_v2, 0.0  ;;  %v28_v5 = vmax.f32 %v26_v3, 0.0 }
   0xa   :  { %29 = vst [vmem:[#allocation5] sm:$0xff] %v27_v4 }
   0xb   :  { %30 = vst [vmem:[#allocation5 + $0x8] sm:$0xff] %v28_v5 }
   0xc   :  { %41 = dma.vmem_to_hbm [thread:$0]  %s37_s12, 256, %s39_s15, [#allocation4]  }
   0xd   :  { %100 = dma.done.wait [#allocation4], 256  }
   0xe   :  { %101 = vsyncadd [#allocation4], 4294967040 }
   0xf   :  { %46 = vsyncpa [#allocation3], 1 }
  0x10   :  { %47 = vsyncpa [#allocation4], 1 }

</bundles_post_ra>
